<compile_context>
chip_gen: v7x
topology: tpu7x:2x2x1
jax: 0.10.0
libtpu: 0.0.40
codegen_flags: <defaults>
</compile_context>

<pallas_src>
import jax
import jax.numpy as jnp
import numpy as np
from jax import lax
from jax.experimental import pallas as pl
from jax.experimental.pallas import tpu as pltpu

# ---- problem shape (small, consistent with the module) ----
B, H, W = 16, 16, 16          # batch (raised to amortize launch cost), spatial
CIN, CMID, COUT = 4, 8, 8     # in / mid / out channels
KH = KW = 3                   # 3x3 convs, padding=1 (SAME)

ROWS = B * H                  # one matmul row per (batch, image-row) = 256
XW = 128                      # x lane width after padding (W*CIN = 64 -> 128)
N_MID = W * CMID              # 128
N_OUT = W * COUT              # 128
K1 = KH * XW                  # 384  conv1 contraction (lane-aligned kh segments)
K2 = KH * N_MID + XW          # 512  conv2 contraction + fused 1x1 shortcut

ROW_BLOCK = 128               # rows per grid step (multiple of H, M>=128)
assert H & (H - 1) == 0       # power-of-two H -> cheap bitwise row index
assert ROW_BLOCK % H == 0 and ROWS % ROW_BLOCK == 0


def resblock_kernel(x_ref, w1b_ref, b1_ref, w2b_ref, b2_ref, out_ref):
    """Fused residual block on one row-block (lane-dense layout).

    x_ref   : (ROW_BLOCK, 128) bf16  row = b*H + h; lanes [0,64)=w*CIN+i, rest 0
    w1b_ref : (384, 128)       bf16  banded conv1 weights (128-lane-aligned kh)
    b1_ref  : (1, 128)         f32   conv1 bias tiled over w
    w2b_ref : (512, 128)       bf16  banded conv2 weights + stacked 1x1 shortcut
    b2_ref  : (1, 128)         f32   (conv2 bias + shortcut bias) tiled over w
    out_ref : (ROW_BLOCK, 128) f32   lane-dense output, col = w*COUT + o
    """
    f32 = jnp.float32
    bf16 = jnp.bfloat16
    rb = x_ref.shape[0]
    x = x_ref[...].astype(f32)                                  # (rb, 128)

    # Row-validity masks for the vertical 3-tap shifts: computed ONCE as
    # (rb, 1) vectors, reused for both x and h1 via broadcasting in jnp.where.
    hh = jnp.bitwise_and(lax.broadcasted_iota(jnp.int32, (rb, 1), 0), H - 1)
    ok_up = hh >= 1            # dh = -1 needs h-1 >= 0
    ok_dn = hh < (H - 1)       # dh = +1 needs h+1 <  H

    def vshift(a, dh, ok):
        # a[(b,h), :] -> a[(b,h+dh), :], zeroed at image top/bottom.
        # XLU sublane rotate; the mask also kills inter-image wraparound rows
        # (valid because ROW_BLOCK is a multiple of H).
        rolled = pltpu.roll(a, shift=(-dh) % rb, axis=0)
        return jnp.where(ok, rolled, 0.0)

    # ---- conv1 (3x3, pad=1) + bias + ReLU : ONE bf16 MXU matmul ----
    # vertical taps via row shifts; horizontal taps + W-padding live in w1b.
    a1 = jnp.concatenate([vshift(x, -1, ok_up), x, vshift(x, 1, ok_dn)],
                         axis=1).astype(bf16)                   # (rb, 384)
    h1 = jnp.dot(a1, w1b_ref[...], preferred_element_type=f32) + b1_ref[...]
    h1 = jnp.maximum(h1, 0.0)                                   # (rb, 128) f32

    # ---- conv2 (3x3, pad=1) + bias, 1x1 shortcut fused into K ----
    a2 = jnp.concatenate([vshift(h1, -1, ok_up), h1, vshift(h1, 1, ok_dn), x],
                         axis=1).astype(bf16)                   # (rb, 512)
    out = jnp.dot(a2, w2b_ref[...], preferred_element_type=f32) + b2_ref[...]

    # ---- residual already summed; final ReLU; dense 128-lane store ----
    out_ref[...] = jnp.maximum(out, 0.0)


@jax.jit
def base_resnet_block(x_nhwc, w1b, b1t, w2b, b2t):
    b = x_nhwc.shape[0]
    rows = b * H
    # view reshape NHWC -> (rows, W*CIN); pad to 128 lanes; bf16 for DMA/MXU
    x_dense = x_nhwc.reshape(rows, W * CIN)
    x_pad = jnp.pad(x_dense, ((0, 0), (0, XW - W * CIN))).astype(jnp.bfloat16)

    flops = 2 * rows * N_OUT * (K1 + K2)
    bytes_accessed = (rows * XW * 2 + K1 * N_MID * 2 + K2 * N_OUT * 2
                      + (N_MID + N_OUT) * 4 + rows * N_OUT * 4)

    out = pl.pallas_call(
        resblock_kernel,
        out_shape=jax.ShapeDtypeStruct((rows, N_OUT), jnp.float32),
        grid_spec=pltpu.PrefetchScalarGridSpec(
            num_scalar_prefetch=0,
            grid=(rows // ROW_BLOCK,),
            in_specs=[
                pl.BlockSpec((ROW_BLOCK, XW), lambda i: (i, 0)),   # x row-block
                pl.BlockSpec((K1, N_MID), lambda i: (0, 0)),       # resident wts
                pl.BlockSpec((1, N_MID), lambda i: (0, 0)),
                pl.BlockSpec((K2, N_OUT), lambda i: (0, 0)),
                pl.BlockSpec((1, N_OUT), lambda i: (0, 0)),
            ],
            out_specs=pl.BlockSpec((ROW_BLOCK, N_OUT), lambda i: (i, 0)),
        ),
        compiler_params=pltpu.CompilerParams(
            dimension_semantics=("parallel",)),   # v7x: shard rows over 2 TCs
        cost_estimate=pl.CostEstimate(flops=flops, transcendentals=0,
                                      bytes_accessed=bytes_accessed),
    )(x_pad, w1b, b1t, w2b, b2t)
    return out.reshape(b, H, W, COUT)


def pack_params(w1, b1, w2, b2, ws, bs):
    """One-time host-side weight packing (layout plumbing, not compute).

    Builds banded matmul weights encoding the horizontal 3-tap structure
    (including zero padding along W) with every kh segment starting on a
    128-lane-aligned K offset, folds the 1x1 shortcut into conv2's contraction
    dimension, tiles biases to the lane-dense width, and casts weights to bf16.
    """
    w1 = np.asarray(w1, np.float32)          # (3,3,CIN,CMID) HWIO
    w2 = np.asarray(w2, np.float32)          # (3,3,CMID,COUT)
    ws = np.asarray(ws, np.float32)          # (CIN,COUT)
    b1 = np.asarray(b1, np.float32).reshape(-1)
    b2 = np.asarray(b2, np.float32).reshape(-1)
    bs = np.asarray(bs, np.float32).reshape(-1)

    w1b = np.zeros((K1, N_MID), np.float32)
    w2b = np.zeros((K2, N_OUT), np.float32)
    for kh in range(KH):
        for kw in range(KW):
            for wi in range(W):
                wp = wi + kw - 1
                if not (0 <= wp < W):
                    continue                              # zero padding along W
                r1 = kh * XW + wp * CIN                   # 128-lane-aligned seg
                w1b[r1:r1 + CIN, wi * CMID:(wi + 1) * CMID] = w1[kh, kw]
                r2 = kh * N_MID + wp * CMID
                w2b[r2:r2 + CMID, wi * COUT:(wi + 1) * COUT] = w2[kh, kw]
    for wi in range(W):                                   # 1x1 shortcut in K
        r = KH * N_MID + wi * CIN
        w2b[r:r + CIN, wi * COUT:(wi + 1) * COUT] = ws

    b1t = np.tile(b1, W).reshape(1, N_MID)
    b2t = np.tile(b2 + bs, W).reshape(1, N_OUT)
    return (jnp.asarray(w1b, dtype=jnp.bfloat16), jnp.asarray(b1t),
            jnp.asarray(w2b, dtype=jnp.bfloat16), jnp.asarray(b2t))


def ref_forward(x_nhwc, w1, b1, w2, b2, ws, bs):
    """Pure-JAX f32 reference (matches the PyTorch module semantics in NHWC)."""
    dn = ('NHWC', 'HWIO', 'NHWC')
    h = lax.conv_general_dilated(x_nhwc, w1, (1, 1), 'SAME',
                                 dimension_numbers=dn) + b1.reshape(1, 1, 1, CMID)
    h = jnp.maximum(h, 0.0)
    branch = lax.conv_general_dilated(h, w2, (1, 1), 'SAME',
                                      dimension_numbers=dn) + b2.reshape(1, 1, 1, COUT)
    sc = lax.conv_general_dilated(x_nhwc, ws.reshape(1, 1, CIN, COUT), (1, 1),
                                  'SAME', dimension_numbers=dn) + bs.reshape(1, 1, 1, COUT)
    return jnp.maximum(branch + sc, 0.0)


if __name__ == "__main__":
    key = jax.random.PRNGKey(0)
    kx, k1, k2, k3, k4, k5, k6 = jax.random.split(key, 7)

    # PyTorch-style NCHW input, then transpose to the kernel's NHWC layout
    x_nchw = jax.random.normal(kx, (B, CIN, H, W), dtype=jnp.float32)
    x_nhwc = jnp.transpose(x_nchw, (0, 2, 3, 1))

    # Deterministic synthetic parameters (HWIO conv weights)
    w1 = 0.1 * jax.random.normal(k1, (KH, KW, CIN, CMID), dtype=jnp.float32)
    b1 = 0.1 * jax.random.normal(k2, (1, CMID), dtype=jnp.float32)
    w2 = 0.1 * jax.random.normal(k3, (KH, KW, CMID, COUT), dtype=jnp.float32)
    b2 = 0.1 * jax.random.normal(k4, (1, COUT), dtype=jnp.float32)
    ws = 0.1 * jax.random.normal(k5, (CIN, COUT), dtype=jnp.float32)
    bs = 0.1 * jax.random.normal(k6, (1, COUT), dtype=jnp.float32)

    # One-time parameter packing (bf16 banded matmul weights + tiled f32 biases)
    w1b, b1t, w2b, b2t = pack_params(w1, b1, w2, b2, ws, bs)

    out = base_resnet_block(x_nhwc, w1b, b1t, w2b, b2t)
    out = jax.block_until_ready(out)

    # bf16 weights/activations on the MXU -> loosened tolerance vs f32 reference
    ref = ref_forward(x_nhwc, w1, b1, w2, b2, ws, bs)
    np.testing.assert_allclose(np.asarray(out), np.asarray(ref),
                               rtol=5e-2, atol=5e-2)
    print("KERNEL_OK")
</pallas_src>

<mosaic_0001>
module attributes {stable_mosaic.version = 11 : i64} {
  func.func @resblock_kernel(%arg0: i32, %arg1: memref<128x128xbf16, #tpu.memory_space<vmem>>, %arg2: memref<384x128xbf16, #tpu.memory_space<vmem>>, %arg3: memref<1x128xf32, #tpu.memory_space<vmem>>, %arg4: memref<512x128xbf16, #tpu.memory_space<vmem>>, %arg5: memref<1x128xf32, #tpu.memory_space<vmem>>, %arg6: memref<128x128xf32, #tpu.memory_space<vmem>>) attributes {dimension_semantics = [#tpu.dimension_semantics<parallel>], iteration_bounds = array<i64: 2>, scalar_prefetch = 0 : i64, scratch_operands = 0 : i64, tpu.core_type = #tpu.core_type<tc>, window_params = [{transform_indices = @transform_0, window_bounds = array<i64: 128, 128>}, {pipeline_mode = #tpu.pipeline_mode<synchronous>, transform_indices = @transform_1, window_bounds = array<i64: 384, 128>}, {pipeline_mode = #tpu.pipeline_mode<synchronous>, transform_indices = @transform_2, window_bounds = array<i64: 1, 128>}, {pipeline_mode = #tpu.pipeline_mode<synchronous>, transform_indices = @transform_3, window_bounds = array<i64: 512, 128>}, {pipeline_mode = #tpu.pipeline_mode<synchronous>, transform_indices = @transform_4, window_bounds = array<i64: 1, 128>}, {transform_indices = @transform_5, window_bounds = array<i64: 128, 128>}]} {
    %c0 = arith.constant 0 : index
    %c0_0 = arith.constant 0 : index
    %0 = vector.load %arg1[%c0, %c0_0] : memref<128x128xbf16, #tpu.memory_space<vmem>>, vector<128x128xbf16>
    %1 = arith.extf %0 : vector<128x128xbf16> to vector<128x128xf32>
    %2 = tpu.iota {dimensions = array<i32: 0>} : vector<128x1xi32>
    %c15_i32 = arith.constant 15 : i32
    %3 = vector.broadcast %c15_i32 : i32 to vector<128x1xi32>
    %4 = arith.andi %2, %3 : vector<128x1xi32>
    %c1_i32 = arith.constant 1 : i32
    %5 = vector.broadcast %c1_i32 : i32 to vector<128x1xi32>
    %6 = arith.cmpi sge, %4, %5 : vector<128x1xi32>
    %c15_i32_1 = arith.constant 15 : i32
    %7 = vector.broadcast %c15_i32_1 : i32 to vector<128x1xi32>
    %8 = arith.cmpi slt, %4, %7 : vector<128x1xi32>
    %c1_i32_2 = arith.constant 1 : i32
    %9 = tpu.dynamic_rotate %1 by %c1_i32_2 dim 0 : vector<128x128xf32>, i32 -> vector<128x128xf32>
    %cst = arith.constant 0.000000e+00 : f32
    %10 = vector.shape_cast %6 : vector<128x1xi1> to vector<128x1xi1>
    %11 = vector.broadcast %10 : vector<128x1xi1> to vector<128x128xi1>
    %12 = vector.broadcast %cst : f32 to vector<128x128xf32>
    %13 = arith.select %11, %9, %12 : vector<128x128xi1>, vector<128x128xf32>
    %c127_i32 = arith.constant 127 : i32
    %14 = tpu.dynamic_rotate %1 by %c127_i32 dim 0 : vector<128x128xf32>, i32 -> vector<128x128xf32>
    %cst_3 = arith.constant 0.000000e+00 : f32
    %15 = vector.shape_cast %8 : vector<128x1xi1> to vector<128x1xi1>
    %16 = vector.broadcast %15 : vector<128x1xi1> to vector<128x128xi1>
    %17 = vector.broadcast %cst_3 : f32 to vector<128x128xf32>
    %18 = arith.select %16, %14, %17 : vector<128x128xi1>, vector<128x128xf32>
    %19 = tpu.concatenate %13, %1, %18 in 1 : vector<128x128xf32>, vector<128x128xf32>, vector<128x128xf32> -> vector<128x384xf32>
    %20 = arith.truncf %19 : vector<128x384xf32> to vector<128x384xbf16>
    %c0_4 = arith.constant 0 : index
    %c0_5 = arith.constant 0 : index
    %21 = vector.load %arg2[%c0_4, %c0_5] : memref<384x128xbf16, #tpu.memory_space<vmem>>, vector<384x128xbf16>
    %cst_6 = arith.constant dense<0.000000e+00> : vector<128x128xf32>
    %22 = tpu.matmul %20, %21, %cst_6 {dimension_numbers = #tpu.dot_dimension_numbers<[1], [0], [0], [1], [0, 0, 1, 1], [], []>} : vector<128x384xbf16>, vector<384x128xbf16>, vector<128x128xf32> -> vector<128x128xf32>
    %c0_7 = arith.constant 0 : index
    %c0_8 = arith.constant 0 : index
    %23 = vector.load %arg3[%c0_7, %c0_8] : memref<1x128xf32, #tpu.memory_space<vmem>>, vector<1x128xf32>
    %24 = vector.broadcast %23 : vector<1x128xf32> to vector<128x128xf32>
    %25 = arith.addf %22, %24 : vector<128x128xf32>
    %cst_9 = arith.constant 0.000000e+00 : f32
    %26 = vector.broadcast %cst_9 : f32 to vector<128x128xf32>
    %27 = arith.maximumf %25, %26 : vector<128x128xf32>
    %c1_i32_10 = arith.constant 1 : i32
    %28 = tpu.dynamic_rotate %27 by %c1_i32_10 dim 0 : vector<128x128xf32>, i32 -> vector<128x128xf32>
    %cst_11 = arith.constant 0.000000e+00 : f32
    %29 = vector.shape_cast %6 : vector<128x1xi1> to vector<128x1xi1>
    %30 = vector.broadcast %29 : vector<128x1xi1> to vector<128x128xi1>
    %31 = vector.broadcast %cst_11 : f32 to vector<128x128xf32>
    %32 = arith.select %30, %28, %31 : vector<128x128xi1>, vector<128x128xf32>
    %c127_i32_12 = arith.constant 127 : i32
    %33 = tpu.dynamic_rotate %27 by %c127_i32_12 dim 0 : vector<128x128xf32>, i32 -> vector<128x128xf32>
    %cst_13 = arith.constant 0.000000e+00 : f32
    %34 = vector.shape_cast %8 : vector<128x1xi1> to vector<128x1xi1>
    %35 = vector.broadcast %34 : vector<128x1xi1> to vector<128x128xi1>
    %36 = vector.broadcast %cst_13 : f32 to vector<128x128xf32>
    %37 = arith.select %35, %33, %36 : vector<128x128xi1>, vector<128x128xf32>
    %38 = tpu.concatenate %32, %27, %37, %1 in 1 : vector<128x128xf32>, vector<128x128xf32>, vector<128x128xf32>, vector<128x128xf32> -> vector<128x512xf32>
    %39 = arith.truncf %38 : vector<128x512xf32> to vector<128x512xbf16>
    %c0_14 = arith.constant 0 : index
    %c0_15 = arith.constant 0 : index
    %40 = vector.load %arg4[%c0_14, %c0_15] : memref<512x128xbf16, #tpu.memory_space<vmem>>, vector<512x128xbf16>
    %cst_16 = arith.constant dense<0.000000e+00> : vector<128x128xf32>
    %41 = tpu.matmul %39, %40, %cst_16 {dimension_numbers = #tpu.dot_dimension_numbers<[1], [0], [0], [1], [0, 0, 1, 1], [], []>} : vector<128x512xbf16>, vector<512x128xbf16>, vector<128x128xf32> -> vector<128x128xf32>
    %c0_17 = arith.constant 0 : index
    %c0_18 = arith.constant 0 : index
    %42 = vector.load %arg5[%c0_17, %c0_18] : memref<1x128xf32, #tpu.memory_space<vmem>>, vector<1x128xf32>
    %43 = vector.broadcast %42 : vector<1x128xf32> to vector<128x128xf32>
    %44 = arith.addf %41, %43 : vector<128x128xf32>
    %cst_19 = arith.constant 0.000000e+00 : f32
    %45 = vector.broadcast %cst_19 : f32 to vector<128x128xf32>
    %46 = arith.maximumf %44, %45 : vector<128x128xf32>
    %c0_20 = arith.constant 0 : index
    %c0_21 = arith.constant 0 : index
    %47 = vector.load %arg6[%c0_20, %c0_21] : memref<128x128xf32, #tpu.memory_space<vmem>>, vector<128x128xf32>
    tpu.vector_store %arg6[%c0_20, %c0_21], %46 {strides = array<i32>} : memref<128x128xf32, #tpu.memory_space<vmem>>, vector<128x128xf32>,
    return
  }
  func.func @transform_0(%arg0: i32) -> (i32, i32) {
    %c0_i32 = arith.constant 0 : i32
    %c0_i32_0 = arith.constant 0 : i32
    return %arg0, %c0_i32 : i32, i32
  }
  func.func @transform_1(%arg0: i32) -> (i32, i32) {
    %c0_i32 = arith.constant 0 : i32
    %c0_i32_0 = arith.constant 0 : i32
    %c0_i32_1 = arith.constant 0 : i32
    return %c0_i32, %c0_i32_0 : i32, i32
  }
  func.func @transform_2(%arg0: i32) -> (i32, i32) {
    %c0_i32 = arith.constant 0 : i32
    %c0_i32_0 = arith.constant 0 : i32
    %c0_i32_1 = arith.constant 0 : i32
    return %c0_i32, %c0_i32_0 : i32, i32
  }
  func.func @transform_3(%arg0: i32) -> (i32, i32) {
    %c0_i32 = arith.constant 0 : i32
    %c0_i32_0 = arith.constant 0 : i32
    %c0_i32_1 = arith.constant 0 : i32
    return %c0_i32, %c0_i32_0 : i32, i32
  }
  func.func @transform_4(%arg0: i32) -> (i32, i32) {
    %c0_i32 = arith.constant 0 : i32
    %c0_i32_0 = arith.constant 0 : i32
    %c0_i32_1 = arith.constant 0 : i32
    return %c0_i32, %c0_i32_0 : i32, i32
  }
  func.func @transform_5(%arg0: i32) -> (i32, i32) {
    %c0_i32 = arith.constant 0 : i32
    %c0_i32_0 = arith.constant 0 : i32
    return %arg0, %c0_i32 : i32, i32
  }
}

</mosaic_0001>

<bundles_post_ra>
// kernel: base_resnet_block.1
= control target key start
LH: loop header
LB: loop body
LE: loop exit
PB: predicated region body
PF: predicated region fallthrough
CT: control target
= control target key end

     0   :  { %s2135_s18 = smov 0   ;;  %s3054_s0 = inlined_call_operand.vmem [shape: bf16[256,128], index: 0, kind: input, shape index: {}]   ;;  %s3055_s1 = inlined_call_operand.vmem [shape: bf16[384,128], index: 1, kind: input, shape index: {}]   ;;  %s3056_s2 = inlined_call_operand.vmem [shape: f32[1,128], index: 2, kind: input, shape index: {}]   ;;  %s3057_s3 = inlined_call_operand.vmem [shape: bf16[512,128], index: 3, kind: input, shape index: {}]   ;;  %s3058_s4 = inlined_call_operand.vmem [shape: f32[1,128], index: 4, kind: input, shape index: {}]   ;;  %s3059_s5 = inlined_call_operand.vmem [shape: f32[256,128], index: 5, kind: output, shape index: {}]  }
   0x1 LB: > { %s1586_s19 = sadd.s32 4294967295, %s2102_s18   ;;  %p1590_p0 = scmp.ge.s32.totalorder %s2102_s18, 1  ;;  %s2102_s18 = sphi %s2135_s18, %s15_s18  }
   0x2   : > { %p188_p1 = scmp.lt.s32.totalorder %s2102_s18, 3 }
   0x4   : > { %p189_p2 = pnand %p1590_p0, %p188_p1 }
   0x6   : > { %192 = sbr.rel (%p189_p2) target bundleno = 624 (0x270), region = 40 }
   0xd   : > { %v2024_v0 = vld [vmem:[%s3055_s1 + $0x40] sm:$0xff]   ;;  %v2026_v2 = vld [vmem:[%s3055_s1 + $0x48] sm:$0xff]   ;;  %v2029_v5 = vld [vmem:[%s3055_s1 + $0x50] sm:$0xff]   ;;  %s1591_s9 = sshll.u32 %s1586_s19, 4  ;;  %v261_v7 = vlaneseq  ;;  %vm2104_vm6 = vmmov 1  }
   0xe   : > { %v2025_v1 = vld [vmem:[%s3055_s1] sm:$0xff]   ;;  %1759 = vmatprep.subr.bf16.mxu0 %v2024_v0  ;;  %v2028_v4 = vld [vmem:[%s3055_s1 + $0x8] sm:$0xff]   ;;  %v2031_v8 = vld [vmem:[%s3055_s1 + $0x10] sm:$0xff]   ;;  %p217_p3 = scmp.lt.s32.totalorder %s1591_s9, 31 }
   0xf   : > { %1760 = vmatpush3.bf16.msra.mxu0 %v2025_v1  ;;  %v2027_v3 = vld [vmem:[%s3055_s1 + $0x80] sm:$0xff]   ;;  %v2030_v6 = vld [vmem:[%s3055_s1 + $0x88] sm:$0xff]   ;;  %v2032_v9 = vld [vmem:[%s3055_s1 + $0x58] sm:$0xff]   ;;  %v2176_v12 = vshrl.u32 %v261_v7, 7 }
  0x10   : > { %1761 = vmatprep.subr.bf16.mxu0 %v2026_v2  ;;  %1967 = vmatprep.subr.bf16.mxu1 %v2027_v3  ;;  %v2033_v10 = vld [vmem:[%s3055_s1 + $0x90] sm:$0xff]   ;;  %v2034_v11 = vld [vmem:[%s3055_s1 + $0x18] sm:$0xff]   ;;  %v2035_v13 = vld [vmem:[%s3055_s1 + $0x60] sm:$0xff]   ;;  %s3200_s9 = smov (!%p217_p3, %s1591_s9), 31 }
  0x11   : > { %1968 = vmatpush3.bf16.msra.mxu1 %v2027_v3  ;;  %v2036_v14 = vld [vmem:[%s3055_s1 + $0x98] sm:$0xff]   ;;  %v2037_v15 = vld [vmem:[%s3055_s1 + $0x20] sm:$0xff]   ;;  %v278_v16 = vand.u32 15, %v2176_v12  ;;  %v263_v18 = vadd.s32 8, %v2176_v12  ;;  %v2038_v19 = vld [vmem:[%s3055_s1 + $0x68] sm:$0xff]   ;;  %v265_v20 = vadd.s32 24, %v2176_v12 }
  0x12   : > { %1969 = vmatprep.subr.bf16.mxu1 %v2030_v6  ;;  %v2039_v17 = vld [vmem:[%s3055_s1 + $0xa0] sm:$0xff]   ;;  %s1592_s29 = sshll.u32 %s3200_s9, 2  ;;  %v264_v21 = vadd.s32 16, %v2176_v12  ;;  %v2040_v22 = vld [vmem:[%s3055_s1 + $0x28] sm:$0xff]   ;;  %v2041_v26 = vld [vmem:[%s3055_s1 + $0x70] sm:$0xff]   ;;  %v2219_v29 = vadd.s32 32, %v2176_v12 }
  0x13   : > { %1762 = vmatpush3.bf16.msra.mxu0 %v2028_v4  ;;  %vm2203_vm0 = vcmp.ge.s32.totalorder %v278_v16, 1  ;;  %v2042_v24 = vld [vmem:[%s3055_s1 + $0xa8] sm:$0xff]   ;;  %v279_v25 = vand.u32 15, %v263_v18  ;;  %s2216_s14 = scalar_lea.vmem %s3054_s0, %s1592_s29  ;;  %v281_v27 = vand.u32 15, %v265_v20  ;;  %v2043_v30 = vld [vmem:[%s3055_s1 + $0x30] sm:$0xff]   ;;  %vm3060_vm1 = vcmp.lt.s32.totalorder %v2176_v12, 1 }
  0x14   : > { %1763 = vmatprep.subr.bf16.mxu0 %v2029_v5  ;;  %v280_v28 = vand.u32 15, %v264_v21  ;;  %v2045_v31 = vld [vmem:[%s3055_s1 + $0xb0] sm:$0xff]   ;;  %v2229_v32 = vld [vmem:[%s2216_s14] sm:$0xff]   ;;  %v2232_v33 = vld [vmem:[%s2216_s14 + $0x38] sm:$0xff]   ;;  %vm3061_vm3 = vcmp.lt.s32.totalorder %v2176_v12, 7  ;;  %v282_v43 = vand.u32 15, %v2219_v29 }
  0x15   : > { %1970 = vmatpush3.bf16.msra.mxu1 %v2030_v6  ;;  %3081 = vst [vmem:[#allocation2_spill] sm:$0xff] %v2232_v33  ;;  %vm2234_vm2 = vcmp.lt.s32.totalorder %v279_v25, 15  ;;  %v2044_v35 = vld [vmem:[%s3055_s1 + $0x78] sm:$0xff]   ;;  %v245_v36 = vunpack.c.l.bf16 %v2229_v32  ;;  %v246_v37 = vunpack.c.h.bf16 %v2229_v32  ;;  %v260_v38 = vunpack.c.h.bf16 %v2232_v33  ;;  %v2246_v39 = vld [vmem:[%s2216_s14 + $0x8] sm:$0xff]   ;;  %v2249_v40 = vld [vmem:[%s2216_s14 + $0x10] sm:$0xff]   ;;  %743 = vmatprep.mubr.bf16.mxu0 %v2229_v32  ;;  %s1594_s25 = sshll.u32 %s3200_s9, 3 }
  0x16   : > { %1971 = vmatprep.subr.bf16.mxu1 %v2033_v10  ;;  %vm2251_vm4 = vcmp.lt.s32.totalorder %v281_v27, 15  ;;  %vm2255_vm5 = vcmp.ge.s32.totalorder %v280_v28, 1  ;;  %v267_v44 = vadd.s32 40, %v2176_v12  ;;  %v2046_v49 = vld [vmem:[%s3055_s1 + $0x38] sm:$0xff]   ;;  %v247_v52 = vunpack.c.l.bf16 %v2246_v39  ;;  %vm2290_vm7 = vmpackc.low %vm2104_vm6, %vm2203_vm0  ;;  %v2297_v0 = vld [vmem:[%s3057_s3 + $0xc0] sm:$0xff]   ;;  %s3013_s28 = scalar_lea.vmem %s3059_s5, %s1594_s25 }
  0x17   : > { %1764 = vmatpush3.bf16.msra.mxu0 %v2031_v8  ;;  %v326_v45 = vrot.slane %v245_v36, 7  ;;  %v327_v46 = vrot.slane %v246_v37, 7  ;;  %v2261_v47 = vrot.slane %v245_v36, 1  ;;  %v408_v48 = vrot.slane %v246_v37, 1  ;;  %v2048_v51 = vld [vmem:[%s3055_s1 + $0xb8] sm:$0xff]   ;;  %vm2302_vm8 = vmpackc.low %vm2234_vm2, %vm2104_vm6  ;;  %v2332_v20 = vld [vmem:[%s3057_s3 + $0xc8] sm:$0xff]  }
  0x18   : > { %1765 = vmatprep.subr.bf16.mxu0 %v2032_v9  ;;  %v2269_v50 = vrot.slane %v260_v38, 7  ;;  %v248_v53 = vunpack.c.h.bf16 %v2246_v39  ;;  %v249_v54 = vunpack.c.l.bf16 %v2249_v40  ;;  %v250_v57 = vunpack.c.h.bf16 %v2249_v40  ;;  %v2307_v5 = vld [vmem:[%s2216_s14 + $0x18] sm:$0xff]   ;;  %vm2339_vm9 = vmpackc.low %vm2251_vm4, %vm2104_vm6  ;;  %v2359_v28 = vld [vmem:[%s3057_s3 + $0x88] sm:$0xff]  }
  0x19   : > { %1972 = vmatpush3.bf16.msra.mxu1 %v2033_v10  ;;  %v357_v55 = vsel %vm3060_vm1, %v326_v45, %v327_v46  ;;  %v438_v56 = vsel %vm3061_vm3, %v2261_v47, %v408_v48  ;;  %v269_v58 = vadd.s32 56, %v2176_v12  ;;  %v328_v61 = vrot.slane %v247_v52, 7  ;;  %v2314_v10 = vld [vmem:[%s2216_s14 + $0x20] sm:$0xff]   ;;  %vm2364_vm11 = vmpackc.low %vm2104_vm6, %vm2255_vm5 }
  0x1a   : > { %1973 = vmatprep.subr.bf16.mxu1 %v2036_v14  ;;  %v358_v59 = vsel %vm3060_vm1, %v2269_v50, %v326_v45  ;;  %v409_v62 = vrot.slane %v247_v52, 1  ;;  %v410_v63 = vrot.slane %v248_v53, 1  ;;  %v411_v3 = vrot.slane %v249_v54, 1  ;;  %v2393_v45 = vld [vmem:[%s3057_s3 + $0xd0] sm:$0xff]  }
  0x1b   : > { %1766 = vmatpush3.bf16.msra.mxu0 %v2034_v11  ;;  %v1629_v1 = vpack.c.bf16 %v357_v55, %v358_v59  ;;  %v329_v4 = vrot.slane %v248_v53, 7  ;;  %v283_v6 = vand.u32 15, %v267_v44  ;;  %v412_v9 = vrot.slane %v250_v57, 1  ;;  %v2401_v52 = vld [vmem:[%s2216_s14 + $0x30] sm:$0xff]  }
  0x1c   : > { %1767 = vmatprep.subr.bf16.mxu0 %v2035_v13  ;;  %v437_v7 = vsel %vm3061_vm3, %v408_v48, %v409_v62  ;;  %v436_v8 = vsel %vm3061_vm3, %v409_v62, %v410_v63  ;;  %v435_v13 = vsel %vm3061_vm3, %v410_v63, %v411_v3  ;;  %v2326_v18 = vrot.slane %v250_v57, 7  ;;  %3102 = vst [vmem:[#allocation3_spill] sm:$0xff] %v2401_v52 }
  0x1d   : > { %1974 = vmatpush3.bf16.msra.mxu1 %v2036_v14  ;;  %v1653_v11 = vpack.c.bf16 %v437_v7, %v438_v56  ;;  %v285_v14 = vand.u32 15, %v269_v58  ;;  %v1656_v16 = vpack.c.bf16 %v435_v13, %v436_v8  ;;  %vm2345_vm10 = vcmp.lt.s32.totalorder %v283_v6, 15 }
  0x1e   : > { %1975 = vmatprep.subr.bf16.mxu1 %v2039_v17  ;;  %v253_v25 = vunpack.c.l.bf16 %v2314_v10  ;;  %v434_v27 = vsel %vm3061_vm3, %v411_v3, %v412_v9  ;;  %v330_v37 = vrot.slane %v249_v54, 7  ;;  %vm2381_vm12 = vmpackc.low %vm2345_vm10, %vm2104_vm6  ;;  %vm2405_vm14 = vcmp.ge.s32.totalorder %v282_v43, 1 }
  0x1f   : > { %1768 = vmatpush3.bf16.msra.mxu0 %v2037_v15  ;;  %v2322_v15 = vld [vmem:[%s3057_s3 + $0x80] sm:$0xff]   ;;  %1983 = vmatprep.mubr.msk.bf16.mxu1 %vm2302_vm8, %v1653_v11  ;;  %vm2385_vm13 = vcmp.lt.s32.totalorder %v285_v14, 15  ;;  %v271_v57 = vadd.s32 72, %v2176_v12  ;;  %v273_v62 = vadd.s32 88, %v2176_v12  ;;  %vm2460_vm4 = vmpackc.low %vm2104_vm6, %vm2405_vm14  ;;  %v277_v53 = vadd.s32 120, %v2176_v12 }
  0x20   : > { %1769 = vmatprep.subr.bf16.mxu0 %v2038_v19  ;;  %v251_v19 = vunpack.c.l.bf16 %v2307_v5  ;;  %v415_v34 = vrot.slane %v253_v25, 1  ;;  %v353_v29 = vsel %vm3060_vm1, %v330_v37, %v2326_v18  ;;  %v354_v43 = vsel %vm3060_vm1, %v329_v4, %v330_v37  ;;  %vm2428_vm15 = vmpackc.low %vm2385_vm13, %vm2104_vm6 }
  0x21   : > { %1976 = vmatpush3.bf16.msra.mxu1 %v2039_v17  ;;  %v356_v17 = vsel %vm3060_vm1, %v327_v46, %v328_v61  ;;  %v287_v63 = vand.u32 15, %v271_v57  ;;  %v289_v6 = vand.u32 15, %v273_v62  ;;  %v270_v37 = vadd.s32 64, %v2176_v12 }
  0x22   : > { %1977 = vmatprep.subr.bf16.mxu1 %v2042_v24  ;;  %v332_v11 = vrot.slane %v251_v19, 7 }
  0x23   : > { %1770 = vmatpush3.bf16.msra.mxu0 %v2040_v22  ;;  %v355_v22 = vsel %vm3060_vm1, %v328_v61, %v329_v4  ;;  %v257_v61 = vunpack.c.l.bf16 %v2401_v52  ;;  %v268_v4 = vadd.s32 48, %v2176_v12  ;;  %vm319_vm0 = vcmp.lt.s32.totalorder %v287_v63, 15 }
  0x24   : > { %1771 = vmatprep.subr.bf16.mxu0 %v2041_v26  ;;  %v413_v26 = vrot.slane %v251_v19, 1  ;;  %v1632_v36 = vpack.c.bf16 %v355_v22, %v356_v17  ;;  %vm2449_vm2 = vmpackc.low %vm319_vm0, %vm2104_vm6  ;;  %v3109_v19 = vmov 0  ;;  %vm321_vm5 = vcmp.lt.s32.totalorder %v289_v6, 15 }
  0x25   : > { %1978 = vmatpush3.bf16.msra.mxu1 %v2042_v24  ;;  %v252_v24 = vunpack.c.h.bf16 %v2307_v5  ;;  %v419_v8 = vrot.slane %v257_v61, 1  ;;  %v3110_v19 = vsel %vm2460_vm4, 4294967295, %v3109_v19  ;;  %vm2475_vm10 = vmpackc.low %vm321_vm5, %vm2104_vm6  ;;  %v286_v6 = vand.u32 15, %v270_v37 }
  0x26   : > { %1979 = vmatprep.subr.bf16.mxu1 %v2045_v31  ;;  %v433_v41 = vsel %vm3061_vm3, %v412_v9, %v413_v26  ;;  %v1635_v9 = vpack.c.bf16 %v353_v29, %v354_v43  ;;  %v293_v29 = vand.u32 15, %v277_v53  ;;  %v3113_v43 = vmov 0 }
  0x27   : > { %1772 = vmatpush3.bf16.msra.mxu0 %v2043_v30  ;;  %v1659_v46 = vpack.c.bf16 %v433_v41, %v434_v27  ;;  %v333_v14 = vrot.slane %v252_v24, 7 }
  0x28   : > { %1773 = vmatprep.subr.bf16.mxu0 %v2044_v35  ;;  %v2371_v35 = vld [vmem:[%s2216_s14 + $0x28] sm:$0xff]  }
  0x29   : > { %1980 = vmatpush3.bf16.msra.mxu1 %v2045_v31  ;;  %v414_v31 = vrot.slane %v252_v24, 1  ;;  %v255_v56 = vunpack.c.l.bf16 %v2371_v35  ;;  %v256_v58 = vunpack.c.h.bf16 %v2371_v35  ;;  %v284_v24 = vand.u32 15, %v268_v4 }
  0x2a   : > { %1981 = vmatprep.subr.bf16.mxu1 %v2048_v51  ;;  %v334_v4 = vrot.slane %v253_v25, 7 }
  0x2b   : > { %1774 = vmatpush3.bf16.msra.mxu0 %v2046_v49  ;;  %v431_v48 = vsel %vm3061_vm3, %v414_v31, %v415_v34  ;;  %v432_v49 = vsel %vm3061_vm3, %v413_v26, %v414_v31  ;;  %v418_v7 = vrot.slane %v256_v58, 1  ;;  %v258_v26 = vunpack.c.h.bf16 %v2401_v52 }
  0x2c   : > { %1903 = vmatprep.subr.bf16.mxu0 %v2297_v0  ;;  %v1662_v55 = vpack.c.bf16 %v431_v48, %v432_v49  ;;  %v259_v31 = vunpack.c.l.bf16 %v2232_v33  ;;  %vm300_vm13 = vcmp.ge.s32.totalorder %v284_v24, 1  ;;  %v274_v24 = vadd.s32 96, %v2176_v12 }
  0x2d   : > { %1982 = vmatpush3.bf16.msra.mxu1 %v2048_v51  ;;  %v254_v51 = vunpack.c.h.bf16 %v2314_v10  ;;  %v427_v22 = vsel %vm3061_vm3, %v418_v7, %v419_v8  ;;  %v420_v44 = vrot.slane %v258_v26, 1  ;;  %vm2503_vm5 = vmpackc.low %vm2104_vm6, %vm300_vm13  ;;  %vm3121_vm13 = vcmp.lt.s32.totalorder %v2176_v12, 1 }
  0x2e   : > { %1630 = vmatmul.mubr.msk.bf16.vlgmr.msra.gmra.mrb[0].mxu0 %vm2290_vm7, %v1629_v1  ;;  %v417_v1 = vrot.slane %v255_v56, 1  ;;  %v421_v49 = vrot.slane %v259_v31, 1 }
  0x2f   : > { %751 = vmatprep.mubr.bf16.mxu0 %v2246_v39  ;;  %1904 = vmatpush3.bf16.msra.mxu0 %v2322_v15  ;;  %v416_v54 = vrot.slane %v254_v51, 1 }
  0x30   : > { %1984 = vmatmul.mubr.msk.bf16.vlgmr.msra.gmra.mrb[0].mxu1 %vm2339_vm9, %v1656_v16  ;;  %1905 = vmatprep.subr.bf16.mxu0 %v2332_v20  ;;  %v428_v23 = vsel %vm3061_vm3, %v417_v1, %v418_v7  ;;  %v425_v57 = vsel %vm3061_vm3, %v420_v44, %v421_v49  ;;  %v3118_v7 = vmov 0 }
  0x31   : > { %1987 = vmatprep.mubr.msk.bf16.mxu1 %vm2381_vm12, %v1659_v46  ;;  %v430_v3 = vsel %vm3061_vm3, %v415_v34, %v416_v54  ;;  %v429_v13 = vsel %vm3061_vm3, %v416_v54, %v417_v1  ;;  %v1668_v27 = vpack.c.bf16 %v427_v22, %v428_v23  ;;  %v275_v34 = vadd.s32 104, %v2176_v12 }
  0x32   : > { %v1665_v17 = vpack.c.bf16 %v429_v13, %v430_v3  ;;  %v352_v46 = vsel %vm3060_vm1, %v2326_v18, %v332_v11  ;;  %v426_v54 = vsel %vm3061_vm3, %v419_v8, %v420_v44  ;;  %v335_v3 = vrot.slane %v254_v51, 7 }
  0x33   : > { %1906 = vmatpush3.bf16.msra.mxu0 %v2359_v28  ;;  %v291_v48 = vand.u32 15, %v275_v34  ;;  %v1671_v62 = vpack.c.bf16 %v425_v57, %v426_v54  ;;  %v272_v8 = vadd.s32 80, %v2176_v12  ;;  %v336_v13 = vrot.slane %v255_v56, 7 }
  0x34   : > { %1907 = vmatprep.subr.bf16.mxu0 %v2393_v45  ;;  %v349_v51 = vsel %vm3121_vm13, %v334_v4, %v335_v3  ;;  %v3127_v56 = vmov 0  ;;  %v338_v34 = vrot.slane %v257_v61, 7  ;;  %v340_v61 = vrot.slane %v259_v31, 7  ;;  %v2584_v31 = vld [vmem:[%s3057_s3 + $0x90] sm:$0xff]  }
  0x35   : > { %vm323_vm14 = vcmp.lt.s32.totalorder %v291_v48, 15  ;;  %v288_v22 = vand.u32 15, %v272_v8  ;;  %v3135_v57 = vmov 0  ;;  %v2075_v8 = vld [vmem:[%s3057_s3 + $0x8] sm:$0xff]  }
  0x36   : > { %1633 = vmatmul.mubr.msk.bf16.gmra.mrb[4].mxu0 %vm2364_vm11, %v1632_v36  ;;  %v351_v36 = vsel %vm3060_vm1, %v332_v11, %v333_v14  ;;  %vm2493_vm0 = vmpackc.low %vm323_vm14, %vm2104_vm6  ;;  %vm325_vm14 = vcmp.lt.s32.totalorder %v293_v29, 15  ;;  %v3123_v11 = vmov 0  ;;  %v2595_v29 = vld [vmem:[%s3057_s3 + $0x98] sm:$0xff]  }
  0x37   : > { %759 = vmatprep.mubr.bf16.mxu0 %v2249_v40  ;;  %v1638_v18 = vpack.c.bf16 %v351_v36, %v352_v46  ;;  %v3114_v43 = vsel %vm2493_vm0, 4294967295, %v3113_v43  ;;  %vm2514_vm1 = vmpackc.low %vm325_vm14, %vm2104_vm6  ;;  %v290_v36 = vand.u32 15, %v274_v24  ;;  %v276_v46 = vadd.s32 112, %v2176_v12  ;;  %1908 = vmatpush3.bf16.msra.mxu0 %v2584_v31  ;;  %v2082_v24 = vld [vmem:[%s3057_s3 + $0x68] sm:$0xff]  }
  0x38   : > { %1988 = vmatmul.mubr.msk.bf16.gmra.mrb[4].mxu1 %vm2428_vm15, %v1662_v55  ;;  %v422_v55 = vrot.slane %v260_v38, 1  ;;  %3115 = vst [vmem:[#allocation4_spill] sm:$0xff] %v3114_v43  ;;  %v3119_v7 = vsel %vm2514_vm1, 4294967295, %v3118_v7 }
  0x39   : > { %1991 = vmatprep.mubr.msk.bf16.mxu1 %vm2449_vm2, %v1665_v17  ;;  %3120 = vst [vmem:[#allocation5_spill] sm:$0xff] %v3119_v7  ;;  %v337_v17 = vrot.slane %v256_v58, 7  ;;  %v339_v58 = vrot.slane %v258_v26, 7  ;;  %v3131_v26 = vmov 0 }
  0x3a   : > { %v424_v63 = vsel %vm3061_vm3, %v421_v49, %v422_v55  ;;  %v439_v38 = vsel %vm3061_vm3, %v422_v55, %v2261_v47  ;;  %vm3122_vm3 = vmmov %vm3121_vm13  ;;  %vm304_vm13 = vcmp.ge.s32.totalorder %v288_v22, 1  ;;  %v292_v49 = vand.u32 15, %v276_v46  ;;  %v2079_v22 = vld [vmem:[%s3057_s3 + $0x18] sm:$0xff]  }
  0x3b   : > { %v1674_v47 = vpack.c.bf16 %v439_v38, %v424_v63  ;;  %v350_v25 = vsel %vm3122_vm3, %v333_v14, %v334_v4  ;;  %v347_v14 = vsel %vm3122_vm3, %v336_v13, %v337_v17  ;;  %v345_v37 = vsel %vm3122_vm3, %v338_v34, %v339_v58  ;;  %v2619_v63 = vld [vmem:[%s3057_s3 + $0xa8] sm:$0xff]   ;;  %v2626_v38 = vld [vmem:[%s3057_s3 + $0xf0] sm:$0xff]   ;;  %v2638_v4 = vld [vmem:[%s3057_s3 + $0xf8] sm:$0xff]  }
  0x3c   : > { %v343_v53 = vsel %vm3122_vm3, %v340_v61, %v2269_v50  ;;  %v2590_v50 = vld [vmem:[%s3057_s3 + $0xd8] sm:$0xff]   ;;  %3139 = vst [vmem:[#allocation11_spill] sm:$0xff] %v2638_v4 }
  0x3d   : > { %1909 = vmatprep.subr.bf16.mxu0 %v2590_v50 }
  0x3e   : > { %1636 = vmatmul.mubr.msk.bf16.gmra.mrb[8].mxu0 %vm2460_vm4, %v1635_v9  ;;  %vm302_vm4 = vcmp.ge.s32.totalorder %v286_v6, 1  ;;  %v1641_v9 = vpack.c.bf16 %v349_v51, %v350_v25  ;;  %v2643_v6 = vld [vmem:[%s3057_s3 + $0xb8] sm:$0xff]   ;;  %v2073_v51 = vld [vmem:[%s3057_s3] sm:$0xff]   ;;  %v2074_v25 = vld [vmem:[%s3057_s3 + $0x48] sm:$0xff]  }
  0x3f   : > { %767 = vmatprep.mubr.bf16.mxu0 %v2307_v5  ;;  %vm2529_vm14 = vmpackc.low %vm2104_vm6, %vm302_vm4  ;;  %1910 = vmatpush3.bf16.msra.mxu0 %v2595_v29  ;;  %3140 = vst [vmem:[#allocation12_spill] sm:$0xff] %v2643_v6 }
  0x40   : > { %1992 = vmatmul.mubr.msk.bf16.gmra.mrb[8].mxu1 %vm2475_vm10, %v1668_v27  ;;  %v3124_v11 = vsel %vm2529_vm14, 4294967295, %v3123_v11  ;;  %vm3126_vm4 = vmmov %vm3122_vm3 }
  0x41   : > { %1995 = vmatprep.mubr.msk.bf16.mxu1 %vm2493_vm0, %v1671_v62  ;;  %3125 = vst [vmem:[#allocation6_spill] sm:$0xff] %v3124_v11  ;;  %v348_v23 = vsel %vm3126_vm4, %v335_v3, %v336_v13  ;;  %vm3130_vm4 = vmmov %vm3122_vm3  ;;  %v2614_v62 = vld [vmem:[%s3057_s3 + $0xe8] sm:$0xff]   ;;  %v2631_v3 = vld [vmem:[%s3057_s3 + $0xb0] sm:$0xff]  }
  0x42   : > { %v1644_v27 = vpack.c.bf16 %v347_v14, %v348_v23  ;;  %v346_v44 = vsel %vm3130_vm4, %v337_v17, %v338_v34  ;;  %vm3134_vm4 = vmmov %vm3122_vm3  ;;  %3138 = vst [vmem:[#allocation10_spill] sm:$0xff] %v2631_v3  ;;  %v2077_v13 = vld [vmem:[%s3057_s3 + $0x10] sm:$0xff]   ;;  %v2078_v17 = vld [vmem:[%s3057_s3 + $0x58] sm:$0xff]  }
  0x43   : > { %v1647_v48 = vpack.c.bf16 %v345_v37, %v346_v44  ;;  %v344_v54 = vsel %vm3134_vm4, %v339_v58, %v340_v61  ;;  %v2080_v14 = vld [vmem:[%s3057_s3 + $0x60] sm:$0xff]   ;;  %v2084_v58 = vld [vmem:[%s3057_s3 + $0x70] sm:$0xff]   ;;  %v2087_v37 = vld [vmem:[%s3057_s3 + $0x38] sm:$0xff]  }
  0x44   : > { %v1650_v55 = vpack.c.bf16 %v343_v53, %v344_v54  ;;  %v2081_v23 = vld [vmem:[%s3057_s3 + $0x20] sm:$0xff]   ;;  %v2085_v34 = vld [vmem:[%s3057_s3 + $0x30] sm:$0xff]  }
  0x46   : > { %1639 = vmatmul.mubr.msk.bf16.gmra.mrb[12].mxu0 %vm2503_vm5, %v1638_v18  ;;  %v2607_v18 = vld [vmem:[%s3057_s3 + $0xa0] sm:$0xff]  }
  0x47   : > { %775 = vmatprep.mubr.bf16.mxu0 %v2314_v10 }
  0x48   : > { %1996 = vmatmul.mubr.msk.bf16.gmra.mrb[12].mxu1 %vm2514_vm1, %v1674_v47  ;;  %vm2546_vm1 = vmpackc.low %vm2104_vm6, %vm304_vm13  ;;  %vm306_vm13 = vcmp.ge.s32.totalorder %v290_v36, 1  ;;  %v2072_v47 = vld [vmem:[%s3057_s3 + $0x40] sm:$0xff]   ;;  %v2086_v36 = vld [vmem:[%s3057_s3 + $0x78] sm:$0xff]  }
  0x49   : > { %v3128_v56 = vsel %vm2546_vm1, 4294967295, %v3127_v56  ;;  %vm2561_vm0 = vmpackc.low %vm2104_vm6, %vm306_vm13  ;;  %1839 = vmatprep.subr.bf16.mxu1 %v2072_v47 }
  0x4a   : > { %3129 = vst [vmem:[#allocation7_spill] sm:$0xff] %v3128_v56  ;;  %v3132_v26 = vsel %vm2561_vm0, 4294967295, %v3131_v26  ;;  %1840 = vmatpush3.bf16.msra.mxu1 %v2073_v51 }
  0x4b   : > { %3133 = vst [vmem:[#allocation8_spill] sm:$0xff] %v3132_v26  ;;  %1841 = vmatprep.subr.bf16.mxu1 %v2074_v25 }
  0x4e   : > { %1642 = vmatmul.mubr.msk.bf16.gmra.mrb[16].mxu0 %vm2529_vm14, %v1641_v9  ;;  %1842 = vmatpush3.bf16.msra.mxu1 %v2075_v8  ;;  %v2076_v9 = vld [vmem:[%s3057_s3 + $0x50] sm:$0xff]  }
  0x4f   : > { %783 = vmatprep.mubr.bf16.mxu0 %v2371_v35  ;;  %1843 = vmatprep.subr.bf16.mxu1 %v2076_v9 }
  0x52   : > { %1844 = vmatpush3.bf16.msra.mxu1 %v2077_v13 }
  0x53   : > { %1845 = vmatprep.subr.bf16.mxu1 %v2078_v17 }
  0x56   : > { %1645 = vmatmul.mubr.msk.bf16.gmra.mrb[20].mxu0 %vm2546_vm1, %v1644_v27  ;;  %vm308_vm1 = vcmp.ge.s32.totalorder %v292_v49, 1  ;;  %1846 = vmatpush3.bf16.msra.mxu1 %v2079_v22  ;;  %v2083_v27 = vld [vmem:[%s3057_s3 + $0x28] sm:$0xff]  }
  0x57   : > { %791 = vmatprep.mubr.bf16.mxu0 %v2401_v52  ;;  %vm2574_vm13 = vmpackc.low %vm2104_vm6, %vm308_vm1  ;;  %1847 = vmatprep.subr.bf16.mxu1 %v2080_v14  ;;  %vm3142_vm6 = vcmp.lt.s32.totalorder %v2176_v12, 7 }
  0x58   : > { %v3136_v57 = vsel %vm2574_vm13, 4294967295, %v3135_v57  ;;  %vm3141_vm1 = vmmov %vm3122_vm3 }
  0x59   : > { %3137 = vst [vmem:[#allocation9_spill] sm:$0xff] %v3136_v57  ;;  %vm3143_vm3 = vmmov %vm3142_vm6 }
  0x5a   : > { %1848 = vmatpush3.bf16.msra.mxu1 %v2081_v23  ;;  %vm3144_vm4 = vmmov %vm3141_vm1 }
  0x5b   : > { %1849 = vmatprep.subr.bf16.mxu1 %v2082_v24 }
  0x5e   : > { %1648 = vmatmul.mubr.msk.bf16.gmra.mrb[24].mxu0 %vm2561_vm0, %v1647_v48  ;;  %1850 = vmatpush3.bf16.msra.mxu1 %v2083_v27  ;;  %v2699_v48 = vld [vmem:[%s3056_s2] ss:$0 sm:$0xff] }
  0x5f   : > { %799 = vmatprep.mubr.bf16.mxu0 %v2232_v33  ;;  %1851 = vmatprep.subr.bf16.mxu1 %v2084_v58 }
  0x62   : > { %1852 = vmatpush3.bf16.msra.mxu1 %v2085_v34 }
  0x63   : > { %1853 = vmatprep.subr.bf16.mxu1 %v2086_v36 }
  0x66   : > { %1651 = vmatmul.mubr.msk.bf16.gmra.mrb[28].mxu0 %vm2574_vm13, %v1650_v55  ;;  %1854 = vmatpush3.bf16.msra.mxu1 %v2087_v37 }
  0x67   : > { %1433 = vmatprep.mubr.bf16.mxu0 %v2229_v32  ;;  %v2602_v32 = vld [vmem:[%s3057_s3 + $0xe0] sm:$0xff]   ;;  %1999 = vmatprep.subr.bf16.mxu1 %v2297_v0 }
  0x68   : > { %1911 = vmatprep.subr.bf16.mxu0 %v2602_v32 }
  0x69   : > { %1912 = vmatpush3.bf16.msra.mxu0 %v2607_v18 }
  0x6a   : > { %1913 = vmatprep.subr.bf16.mxu0 %v2614_v62 }
  0x6d   : > { %1914 = vmatpush3.bf16.msra.mxu0 %v2619_v63 }
  0x6e   : > { %1915 = vmatprep.subr.bf16.mxu0 %v2626_v38 }
  0x71   : > { %1916 = vmatpush3.bf16.msra.mxu0 %v2631_v3 }
  0x72   : > { %1917 = vmatprep.subr.bf16.mxu0 %v2638_v4 }
  0x75   : > { %1918 = vmatpush3.bf16.msra.mxu0 %v2643_v6 }
 0x101   : > { %v1775_v44 = vpop.f32.mrb[0].mxu0 }
 0x102   : > { %v1776_v46 = vpop.f32.mrb[1].mxu0 }
 0x103   : > { %v1777_v61 = vadd.f32 %v1776_v46, %v1775_v44  ;;  %v1778_v49 = vpop.f32.mrb[2].mxu0  ;;  %v1985_v54 = vpop.f32.mrb[0].mxu1 }
 0x104   : > { %v1779_v53 = vpop.f32.mrb[3].mxu0  ;;  %v842_v51 = vpop.f32.mrb[1].mxu1 }
 0x105   : > { %v1780_v55 = vadd.f32 %v1779_v53, %v1778_v49  ;;  %v746_v47 = vadd.f32 %v1777_v61, %v2699_v48  ;;  %v1986_v25 = vpop.f32.mrb[2].mxu1 }
 0x106   : > { %v845_v0 = vpop.f32.mrb[3].mxu1 }
 0x107   : > { %v843_v8 = vadd.f32 %v842_v51, %v746_v47  ;;  %v749_v9 = vadd.f32 %v1780_v55, %v2699_v48 }
 0x109   : > { %v2703_v13 = vmax.f32 %v843_v8, 0.0  ;;  %v846_v17 = vadd.f32 %v845_v0, %v749_v9  ;;  %v1781_v22 = vpop.f32.mrb[4].mxu0 }
 0x10a   : > { %v1782_v14 = vpop.f32.mrb[5].mxu0 }
 0x10b   : > { %v906_v23 = vmax.f32 %v846_v17, 0.0  ;;  %v1783_v24 = vadd.f32 %v1782_v14, %v1781_v22  ;;  %v1784_v27 = vpop.f32.mrb[6].mxu0  ;;  %v3066_v58 = vrot.slane %v2703_v13, 7  ;;  %v3070_v34 = vrot.slane %v2703_v13, 1  ;;  %v2707_v37 = vpop.f32.mrb[4].mxu1 }
 0x10c   : > { %v1785_v36 = vpop.f32.mrb[7].mxu0  ;;  %v858_v53 = vpop.f32.mrb[5].mxu1 }
 0x10d   : > { %v922_v44 = vrot.slane %v906_v23, 7  ;;  %v970_v46 = vrot.slane %v906_v23, 1  ;;  %v754_v61 = vadd.f32 %v1783_v24, %v2699_v48  ;;  %v1786_v49 = vadd.f32 %v1785_v36, %v1784_v27  ;;  %v2711_v47 = vpop.f32.mrb[6].mxu1 }
 0x10e   : > { %v1018_v55 = vpack.c.bf16 %v906_v23, %v2703_v13  ;;  %v861_v17 = vpop.f32.mrb[7].mxu1 }
 0x10f   : > { %v2717_v51 = vsel %vm3141_vm1, %v3066_v58, %v922_v44  ;;  %v999_v8 = vsel %vm3142_vm6, %v3070_v34, %v970_v46  ;;  %v851_v9 = vadd.f32 %v1985_v54, %v754_v61  ;;  %v757_v0 = vadd.f32 %v1786_v49, %v2699_v48  ;;  %vm3145_vm1 = vmmov %vm3143_vm3 }
 0x110   : > { %1336 = vmatprep.mubr.bf16.mxu1 %v1018_v55  ;;  %vm3146_vm6 = vmmov %vm3144_vm4 }
 0x111   : > { %v2724_v22 = vmax.f32 %v851_v9, 0.0  ;;  %v854_v14 = vadd.f32 %v1986_v25, %v757_v0  ;;  %v1787_v23 = vpop.f32.mrb[8].mxu0 }
 0x112   : > { %v1788_v24 = vpop.f32.mrb[9].mxu0 }
 0x113   : > { %v923_v27 = vrot.slane %v2724_v22, 7  ;;  %v971_v36 = vrot.slane %v2724_v22, 1  ;;  %v2728_v58 = vmax.f32 %v854_v14, 0.0  ;;  %v1789_v7 = vadd.f32 %v1788_v24, %v1787_v23  ;;  %v1790_v33 = vpop.f32.mrb[10].mxu0  ;;  %v2730_v34 = vpop.f32.mrb[8].mxu1 }
 0x114   : > { %v1791_v43 = vpop.f32.mrb[11].mxu0  ;;  %v874_v55 = vpop.f32.mrb[9].mxu1 }
 0x115   : > { %v998_v54 = vsel %vm3143_vm3, %v970_v46, %v971_v36  ;;  %v924_v61 = vrot.slane %v2728_v58, 7  ;;  %v972_v25 = vrot.slane %v2728_v58, 1  ;;  %v1792_v49 = vadd.f32 %v1791_v43, %v1790_v33  ;;  %v2737_v52 = vpop.f32.mrb[10].mxu1  ;;  %vm3148_vm3 = vmmov %vm3144_vm4 }
 0x116   : > { %v1734_v9 = vpack.c.bf16 %v998_v54, %v999_v8  ;;  %v762_v0 = vadd.f32 %v1789_v7, %v2699_v48  ;;  %v2743_v23 = vsel %vm3144_vm4, %v922_v44, %v923_v27  ;;  %v877_v57 = vpop.f32.mrb[11].mxu1  ;;  %vm3149_vm4 = vmmov %vm3145_vm1 }
 0x117   : > { %v765_v46 = vadd.f32 %v1792_v49, %v2699_v48  ;;  %v997_v24 = vsel %vm3145_vm1, %v971_v36, %v972_v25  ;;  %v2750_v33 = vsel %vm3146_vm6, %v923_v27, %v924_v61 }
 0x118   : > { %v859_v43 = vadd.f32 %v858_v53, %v762_v0  ;;  %1735 = vmatmul.mubr.msk.bf16.vlgmr.msra.gmra.mrb[32].mxu0 %vm2302_vm8, %v1734_v9  ;;  %vm3147_vm8 = vmmov %vm3145_vm1  ;;  %v3175_v12 = vpack.c.bf16 %v2750_v33, %v2743_v23 }
 0x119   : > { %v862_v8 = vadd.f32 %v861_v17, %v765_v46  ;;  %v1793_v44 = vpop.f32.mrb[12].mxu0  ;;  %1441 = vmatprep.mubr.bf16.mxu0 %v2246_v39  ;;  %vm3150_vm1 = vmmov %vm3148_vm3 }
 0x11a   : > { %v2757_v54 = vmax.f32 %v859_v43, 0.0  ;;  %v1794_v49 = vpop.f32.mrb[13].mxu0  ;;  %vm3152_vm6 = vmmov %vm3150_vm1 }
 0x11b   : > { %v2759_v36 = vmax.f32 %v862_v8, 0.0  ;;  %v1795_v14 = vadd.f32 %v1794_v49, %v1793_v44  ;;  %v1796_v26 = vpop.f32.mrb[14].mxu0  ;;  %v2763_v9 = vpop.f32.mrb[12].mxu1 }
 0x11c   : > { %v925_v27 = vrot.slane %v2757_v54, 7  ;;  %v973_v53 = vrot.slane %v2757_v54, 1  ;;  %v1797_v2 = vpop.f32.mrb[15].mxu0  ;;  %v2768_v43 = vpop.f32.mrb[13].mxu1 }
 0x11d   : > { %v926_v0 = vrot.slane %v2759_v36, 7  ;;  %v974_v17 = vrot.slane %v2759_v36, 1  ;;  %v770_v39 = vadd.f32 %v1795_v14, %v2699_v48  ;;  %v1798_v46 = vadd.f32 %v1797_v2, %v1796_v26  ;;  %v2772_v44 = vpop.f32.mrb[14].mxu1 }
 0x11e   : > { %v996_v8 = vsel %vm3147_vm8, %v972_v25, %v973_v53  ;;  %v2778_v7 = vsel %vm3148_vm3, %v924_v61, %v925_v27  ;;  %v2784_v2 = vpop.f32.mrb[15].mxu1  ;;  %vm3153_vm8 = vmmov %vm3149_vm4  ;;  %v3176_v60 = vpack.c.bf16 %v2759_v36, %v2757_v54 }
 0x11f   : > { %v867_v56 = vadd.f32 %v2707_v37, %v770_v39  ;;  %v773_v11 = vadd.f32 %v1798_v46, %v2699_v48  ;;  %v1737_v14 = vpack.c.bf16 %v996_v8, %v997_v24  ;;  %v995_v26 = vsel %vm3149_vm4, %v973_v53, %v974_v17  ;;  %vm3154_vm3 = vmmov %vm3150_vm1 }
 0x120   : > { %v2788_v25 = vsel %vm3150_vm1, %v925_v27, %v926_v0 }
 0x121   : > { %v2790_v6 = vmax.f32 %v867_v56, 0.0  ;;  %v870_v49 = vadd.f32 %v2711_v47, %v773_v11  ;;  %1738 = vmatmul.mubr.msk.bf16.gmra.mrb[36].mxu0 %vm2339_vm9, %v1737_v14  ;;  %v1799_v37 = vpop.f32.mrb[16].mxu0  ;;  %vm3151_vm9 = vmmov %vm3149_vm4 }
 0x122   : > { %v1800_v24 = vpop.f32.mrb[17].mxu0  ;;  %1449 = vmatprep.mubr.bf16.mxu0 %v2249_v40 }
 0x123   : > { %v927_v53 = vrot.slane %v2790_v6, 7  ;;  %v975_v39 = vrot.slane %v2790_v6, 1  ;;  %v2800_v27 = vmax.f32 %v870_v49, 0.0  ;;  %v1801_v56 = vadd.f32 %v1800_v24, %v1799_v37  ;;  %v1802_v46 = vpop.f32.mrb[18].mxu0 }
 0x124   : > { %v1803_v8 = vpop.f32.mrb[19].mxu0 }
 0x125   : > { %v928_v11 = vrot.slane %v2800_v27, 7  ;;  %v976_v21 = vrot.slane %v2800_v27, 1  ;;  %v1804_v47 = vadd.f32 %v1803_v8, %v1802_v46  ;;  %v778_v14 = vadd.f32 %v1801_v56, %v2699_v48 }
 0x126   : > { %v994_v61 = vsel %vm3151_vm9, %v974_v17, %v975_v39  ;;  %v2811_v49 = vsel %vm3152_vm6, %v926_v0, %v927_v53  ;;  %vm3158_vm9 = vmmov %vm3154_vm3 }
 0x127   : > { %v875_v37 = vadd.f32 %v874_v55, %v778_v14  ;;  %v781_v24 = vadd.f32 %v1804_v47, %v2699_v48  ;;  %v1740_v4 = vpack.c.bf16 %v994_v61, %v995_v26  ;;  %v993_v3 = vsel %vm3153_vm8, %v975_v39, %v976_v21  ;;  %vm3160_vm6 = vmmov %vm3154_vm3 }
 0x128   : > { %v2818_v56 = vsel %vm3154_vm3, %v927_v53, %v928_v11 }
 0x129   : > { %v2820_v46 = vmax.f32 %v875_v37, 0.0  ;;  %v878_v17 = vadd.f32 %v877_v57, %v781_v24  ;;  %1741 = vmatmul.mubr.msk.bf16.gmra.mrb[40].mxu0 %vm2381_vm12, %v1740_v4  ;;  %v1805_v8 = vpop.f32.mrb[20].mxu0  ;;  %vm3155_vm12 = vmmov %vm3149_vm4 }
 0x12a   : > { %v1806_v0 = vpop.f32.mrb[21].mxu0  ;;  %1457 = vmatprep.mubr.bf16.mxu0 %v2307_v5  ;;  %vm3156_vm4 = vmmov %vm3150_vm1 }
 0x12b   : > { %v929_v26 = vrot.slane %v2820_v46, 7  ;;  %v977_v61 = vrot.slane %v2820_v46, 1  ;;  %v2829_v39 = vmax.f32 %v878_v17, 0.0  ;;  %v1807_v53 = vadd.f32 %v1806_v0, %v1805_v8  ;;  %v1808_v47 = vpop.f32.mrb[22].mxu0  ;;  %vm3157_vm1 = vmmov %vm3153_vm8 }
 0x12c   : > { %v1809_v14 = vpop.f32.mrb[23].mxu0  ;;  %vm3161_vm8 = vmmov %vm3157_vm1 }
 0x12d   : > { %v930_v57 = vrot.slane %v2829_v39, 7  ;;  %v978_v42 = vrot.slane %v2829_v39, 1  ;;  %v786_v4 = vadd.f32 %v1807_v53, %v2699_v48  ;;  %v1810_v37 = vadd.f32 %v1809_v14, %v1808_v47 }
 0x12e   : > { %v992_v24 = vsel %vm3155_vm12, %v976_v21, %v977_v61  ;;  %v2840_v17 = vsel %vm3156_vm4, %v928_v11, %v929_v26  ;;  %vm3163_vm12 = vmmov %vm3154_vm3  ;;  %v3181_v30 = vpack.c.bf16 %v2829_v39, %v2820_v46 }
 0x12f   : > { %v883_v8 = vadd.f32 %v2730_v34, %v786_v4  ;;  %v789_v0 = vadd.f32 %v1810_v37, %v2699_v48  ;;  %v1743_v55 = vpack.c.bf16 %v992_v24, %v993_v3  ;;  %v991_v40 = vsel %vm3157_vm1, %v977_v61, %v978_v42  ;;  %vm3164_vm4 = vmmov %vm3157_vm1 }
 0x130   : > { %v2848_v53 = vsel %vm3158_vm9, %v929_v26, %v930_v57 }
 0x131   : > { %v2850_v21 = vmax.f32 %v883_v8, 0.0  ;;  %v886_v47 = vadd.f32 %v2737_v52, %v789_v0  ;;  %1744 = vmatmul.mubr.msk.bf16.gmra.mrb[44].mxu0 %vm2428_vm15, %v1743_v55  ;;  %v1811_v11 = vpop.f32.mrb[24].mxu0  ;;  %vm3159_vm15 = vmmov %vm3157_vm1 }
 0x132   : > { %v1812_v14 = vpop.f32.mrb[25].mxu0  ;;  %1465 = vmatprep.mubr.bf16.mxu0 %v2314_v10 }
 0x133   : > { %v931_v3 = vrot.slane %v2850_v21, 7  ;;  %v979_v61 = vrot.slane %v2850_v21, 1  ;;  %v2860_v26 = vmax.f32 %v886_v47, 0.0  ;;  %v1813_v4 = vadd.f32 %v1812_v14, %v1811_v11  ;;  %v1814_v37 = vpop.f32.mrb[26].mxu0 }
 0x134   : > { %v1815_v24 = vpop.f32.mrb[27].mxu0 }
 0x135   : > { %v932_v52 = vrot.slane %v2860_v26, 7  ;;  %v980_v59 = vrot.slane %v2860_v26, 1  ;;  %v1816_v55 = vadd.f32 %v1815_v24, %v1814_v37  ;;  %v794_v8 = vadd.f32 %v1813_v4, %v2699_v48 }
 0x136   : > { %v990_v0 = vsel %vm3159_vm15, %v978_v42, %v979_v61  ;;  %v2871_v47 = vsel %vm3160_vm6, %v930_v57, %v931_v3  ;;  %v3187_v1 = vpack.c.bf16 %v2860_v26, %v2850_v21 }
 0x137   : > { %v891_v11 = vadd.f32 %v2768_v43, %v794_v8  ;;  %v797_v14 = vadd.f32 %v1816_v55, %v2699_v48  ;;  %v1746_v34 = vpack.c.bf16 %v990_v0, %v991_v40  ;;  %v989_v37 = vsel %vm3161_vm8, %v979_v61, %v980_v59 }
 0x138   : > { %v2879_v4 = vsel %vm3154_vm3, %v931_v3, %v932_v52 }
 0x139   : > { %v2881_v42 = vmax.f32 %v891_v11, 0.0  ;;  %v894_v24 = vadd.f32 %v2784_v2, %v797_v14  ;;  %1747 = vmatmul.mubr.msk.bf16.gmra.mrb[48].mxu0 %vm2449_vm2, %v1746_v34  ;;  %v1817_v57 = vpop.f32.mrb[28].mxu0  ;;  %vm3162_vm2 = vmmov %vm3157_vm1 }
 0x13a   : > { %v1818_v55 = vpop.f32.mrb[29].mxu0  ;;  %1473 = vmatprep.mubr.bf16.mxu0 %v2371_v35  ;;  %vm3165_vm1 = vmmov %vm3154_vm3 }
 0x13b   : > { %v933_v40 = vrot.slane %v2881_v42, 7  ;;  %v981_v61 = vrot.slane %v2881_v42, 1  ;;  %v918_v3 = vmax.f32 %v894_v24, 0.0  ;;  %v1819_v8 = vadd.f32 %v1818_v55, %v1817_v57  ;;  %v1820_v0 = vpop.f32.mrb[30].mxu0  ;;  %vm3166_vm9 = vmmov %vm3162_vm2 }
 0x13c   : > { %v1821_v11 = vpop.f32.mrb[31].mxu0  ;;  %vm3167_vm15 = vmmov %vm3165_vm1 }
 0x13d   : > { %v934_v10 = vrot.slane %v918_v3, 7  ;;  %v982_v2 = vrot.slane %v918_v3, 1  ;;  %v802_v16 = vadd.f32 %v1819_v8, %v2699_v48  ;;  %v1822_v34 = vadd.f32 %v1821_v11, %v1820_v0  ;;  %vm3169_vm6 = vmmov %vm3165_vm1 }
 0x13e   : > { %v988_v14 = vsel %vm3162_vm2, %v980_v59, %v981_v61  ;;  %v1036_v43 = vpack.c.bf16 %v918_v3, %v2881_v42  ;;  %v940_v35 = vsel %vm3163_vm12, %v932_v52, %v933_v40  ;;  %vm3171_vm8 = vmmov %vm3162_vm2 }
 0x13f   : > { %v987_v5 = vsel %vm3164_vm4, %v981_v61, %v982_v2  ;;  %v899_v24 = vadd.f32 %v2763_v9, %v802_v16  ;;  %v805_v57 = vadd.f32 %v1822_v34, %v2699_v48  ;;  %v1749_v55 = vpack.c.bf16 %v988_v14, %v989_v37  ;;  %vm3173_vm3 = vmmov %vm3162_vm2 }
 0x140   : > { %v939_v8 = vsel %vm3165_vm1, %v933_v40, %v934_v10  ;;  %v3168_v34 = vrot.slane %v2703_v13, 7 }
 0x141   : > { %v919_v0 = vmax.f32 %v899_v24, 0.0  ;;  %v902_v11 = vadd.f32 %v2772_v44, %v805_v57  ;;  %1750 = vmatmul.mubr.msk.bf16.gmra.mrb[52].mxu0 %vm2475_vm10, %v1749_v55  ;;  %v1728_v59 = vpack.c.bf16 %v939_v8, %v940_v35  ;;  %vm3170_vm10 = vmmov %vm3165_vm1  ;;  %v3174_v57 = vpack.c.bf16 %v2728_v58, %v2724_v22  ;;  %v3197_v58 = vld [vmem:[#allocation5_spill] sm:$0xff] }
 0x143   : > { %v935_v42 = vrot.slane %v919_v0, 7  ;;  %v983_v52 = vrot.slane %v919_v0, 1  ;;  %v920_v3 = vmax.f32 %v902_v11, 0.0 }
 0x145   : > { %v986_v61 = vsel %vm3166_vm9, %v982_v2, %v983_v52  ;;  %v936_v9 = vrot.slane %v920_v3, 7  ;;  %v984_v16 = vrot.slane %v920_v3, 1  ;;  %v1039_v48 = vpack.c.bf16 %v920_v3, %v919_v0 }
 0x146   : > { %v1752_v37 = vpack.c.bf16 %v986_v61, %v987_v5  ;;  %v938_v40 = vsel %vm3167_vm15, %v934_v10, %v935_v42  ;;  %v3172_v2 = vrot.slane %v2703_v13, 1  ;;  %v3196_v13 = vld [vmem:[#allocation2_spill] sm:$0xff] }
 0x147   : > { %v952_v41 = vsel %vm3169_vm6, %v936_v9, %v3168_v34  ;;  %v937_v44 = vsel %vm3170_vm10, %v935_v42, %v936_v9  ;;  %v985_v14 = vsel %vm3171_vm8, %v983_v52, %v984_v16 }
 0x148   : > { %v1000_v35 = vsel %vm3173_vm3, %v984_v16, %v3172_v2  ;;  %v1710_v5 = vpack.c.bf16 %v2717_v51, %v952_v41  ;;  %v1731_v24 = vpack.c.bf16 %v937_v44, %v938_v40 }
 0x149   : > { %v1755_v10 = vpack.c.bf16 %v1000_v35, %v985_v14  ;;  %v3005_v14 = vld [vmem:[%s3058_s4] ss:$0 sm:$0xff] }
 0x14a   : > { %1711 = vmatmul.mubr.msk.bf16.vlgmr.msra.gmra.mrb[16].mxu1 %vm2290_vm7, %v1710_v5  ;;  %vm3178_vm7 = vnez %v3110_v19  ;;  %v3183_v19 = vld [vmem:[#allocation11_spill] sm:$0xff] }
 0x14b   : > { %2007 = vmatpush3.bf16.msra.mxu1 %v2322_v15  ;;  %1344 = vmatprep.mubr.bf16.mxu1 %v3174_v57  ;;  %v3177_v15 = vpack.c.bf16 %v2788_v25, %v2778_v7 }
 0x14c   : > { %2000 = vmatprep.subr.bf16.mxu1 %v2332_v20  ;;  %v3179_v20 = vpack.c.bf16 %v2800_v27, %v2790_v6  ;;  %v3194_v6 = vld [vmem:[#allocation4_spill] sm:$0xff] }
 0x14f   : > { %2008 = vmatpush3.bf16.msra.mxu1 %v2359_v28  ;;  %v3180_v28 = vpack.c.bf16 %v2818_v56, %v2811_v49 }
 0x150   : > { %2001 = vmatprep.subr.bf16.mxu1 %v2393_v45  ;;  %v3182_v45 = vld [vmem:[#allocation10_spill] sm:$0xff] }
 0x152   : > { %1714 = vmatmul.mubr.msk.bf16.gmra.mrb[20].mxu1 %vm2364_vm11, %v3175_v12 }
 0x153   : > { %1352 = vmatprep.mubr.bf16.mxu1 %v3176_v60  ;;  %2009 = vmatpush3.bf16.msra.mxu1 %v2584_v31  ;;  %v3184_v31 = vld [vmem:[#allocation12_spill] sm:$0xff] }
 0x154   : > { %2002 = vmatprep.subr.bf16.mxu1 %v2590_v50  ;;  %v3185_v50 = vpack.c.bf16 %v2848_v53, %v2840_v17 }
 0x157   : > { %2010 = vmatpush3.bf16.msra.mxu1 %v2595_v29 }
 0x158   : > { %2003 = vmatprep.subr.bf16.mxu1 %v2602_v32  ;;  %v3188_v32 = vpack.c.bf16 %v2879_v4, %v2871_v47 }
 0x15a   : > { %1717 = vmatmul.mubr.msk.bf16.gmra.mrb[24].mxu1 %vm3178_vm7, %v3177_v15 }
 0x15b   : > { %1360 = vmatprep.mubr.bf16.mxu1 %v3179_v20  ;;  %2011 = vmatpush3.bf16.msra.mxu1 %v2607_v18  ;;  %v3189_v18 = vld [vmem:[#allocation7_spill] sm:$0xff] }
 0x15c   : > { %2004 = vmatprep.subr.bf16.mxu1 %v2614_v62  ;;  %vm3190_vm11 = vnez %v3189_v18 }
 0x15f   : > { %2012 = vmatpush3.bf16.msra.mxu1 %v2619_v63 }
 0x160   : > { %2005 = vmatprep.subr.bf16.mxu1 %v2626_v38  ;;  %v3193_v38 = vld [vmem:[#allocation3_spill] sm:$0xff] }
 0x162   : > { %1720 = vmatmul.mubr.msk.bf16.gmra.mrb[28].mxu1 %vm2503_vm5, %v3180_v28  ;;  %vm3195_vm5 = vnez %v3194_v6 }
 0x163   : > { %1368 = vmatprep.mubr.bf16.mxu1 %v3181_v30  ;;  %2013 = vmatpush3.bf16.msra.mxu1 %v3182_v45 }
 0x164   : > { %2006 = vmatprep.subr.bf16.mxu1 %v3183_v19 }
 0x167   : > { %2014 = vmatpush3.bf16.msra.mxu1 %v3184_v31 }
 0x16a   : > { %1723 = vmatmul.mubr.msk.bf16.gmra.mrb[32].mxu1 %vm2529_vm14, %v3185_v50  ;;  %vm3198_vm14 = vnez %v3197_v58 }
 0x16b   : > { %1376 = vmatprep.mubr.bf16.mxu1 %v3187_v1 }
 0x172   : > { %1726 = vmatmul.mubr.msk.bf16.gmra.mrb[36].mxu1 %vm3190_vm11, %v3188_v32 }
 0x173   : > { %1384 = vmatprep.mubr.bf16.mxu1 %v1036_v43 }
 0x17a   : > { %1729 = vmatmul.mubr.msk.bf16.gmra.mrb[40].mxu1 %vm2561_vm0, %v1728_v59 }
 0x17b   : > { %1392 = vmatprep.mubr.bf16.mxu1 %v1039_v48 }
 0x182   : > { %1732 = vmatmul.mubr.msk.bf16.gmra.mrb[44].mxu1 %vm2574_vm13, %v1731_v24 }
 0x183   : > { %1481 = vmatprep.mubr.bf16.mxu1 %v3193_v38 }
 0x18a   : > { %1753 = vmatmul.mubr.msk.bf16.vlgmr.msra.gmra.mrb[48].mxu1 %vm3195_vm5, %v1752_v37 }
 0x18b   : > { %1489 = vmatprep.mubr.bf16.mxu1 %v3196_v13 }
 0x192   : > { %1756 = vmatmul.mubr.msk.bf16.gmra.mrb[52].mxu1 %vm3198_vm14, %v1755_v10 }
 0x1eb   : > { %v1919_v51 = vpop.f32.mrb[32].mxu0 }
 0x1ec   : > { %v1920_v22 = vpop.f32.mrb[33].mxu0 }
 0x1ed   : > { %v1921_v23 = vadd.f32 %v1920_v22, %v1919_v51  ;;  %v1922_v33 = vpop.f32.mrb[34].mxu0 }
 0x1ee   : > { %v1923_v7 = vpop.f32.mrb[35].mxu0 }
 0x1ef   : > { %v1924_v54 = vadd.f32 %v1923_v7, %v1922_v33 }
 0x1f4   : > { %v1925_v36 = vpop.f32.mrb[36].mxu0 }
 0x1f5   : > { %v1926_v25 = vpop.f32.mrb[37].mxu0 }
 0x1f6   : > { %v1927_v27 = vadd.f32 %v1926_v25, %v1925_v36  ;;  %v1928_v49 = vpop.f32.mrb[38].mxu0 }
 0x1f7   : > { %v1929_v56 = vpop.f32.mrb[39].mxu0 }
 0x1f8   : > { %v1930_v46 = vadd.f32 %v1929_v56, %v1928_v49 }
 0x1fc   : > { %v1931_v39 = vpop.f32.mrb[40].mxu0 }
 0x1fd   : > { %v1932_v17 = vpop.f32.mrb[41].mxu0 }
 0x1fe   : > { %v1933_v53 = vadd.f32 %v1932_v17, %v1931_v39  ;;  %v1934_v21 = vpop.f32.mrb[42].mxu0 }
 0x1ff   : > { %v1935_v26 = vpop.f32.mrb[43].mxu0 }
 0x200   : > { %v1936_v47 = vadd.f32 %v1935_v26, %v1934_v21 }
 0x204   : > { %v1937_v4 = vpop.f32.mrb[44].mxu0 }
 0x205   : > { %v1938_v43 = vpop.f32.mrb[45].mxu0 }
 0x206   : > { %v2990_v55 = vadd.f32 %v1938_v43, %v1937_v4  ;;  %v1940_v8 = vpop.f32.mrb[46].mxu0 }
 0x207   : > { %v1941_v0 = vpop.f32.mrb[47].mxu0 }
 0x208   : > { %v2992_v11 = vadd.f32 %v1941_v0, %v1940_v8 }
 0x20c   : > { %v1943_v59 = vpop.f32.mrb[48].mxu0 }
 0x20d   : > { %v1944_v42 = vpop.f32.mrb[49].mxu0 }
 0x20e   : > { %v2994_v52 = vadd.f32 %v1944_v42, %v1943_v59  ;;  %v1946_v3 = vpop.f32.mrb[50].mxu0 }
 0x20f   : > { %v1947_v61 = vpop.f32.mrb[51].mxu0 }
 0x210   : > { %v2996_v9 = vadd.f32 %v1947_v61, %v1946_v3 }
 0x214   : > { %v1949_v16 = vpop.f32.mrb[52].mxu0 }
 0x215   : > { %v1950_v48 = vpop.f32.mrb[53].mxu0 }
 0x216   : > { %v2998_v37 = vadd.f32 %v1950_v48, %v1949_v16  ;;  %v1952_v40 = vpop.f32.mrb[54].mxu0 }
 0x217   : > { %v1953_v34 = vpop.f32.mrb[55].mxu0 }
 0x218   : > { %v3000_v41 = vadd.f32 %v1953_v34, %v1952_v40 }
 0x21d   : > { %v1855_v44 = vpop.f32.mrb[16].mxu1 }
 0x21e   : > { %v1856_v2 = vpop.f32.mrb[17].mxu1 }
 0x21f   : > { %v1857_v35 = vadd.f32 %v1856_v2, %v1855_v44  ;;  %v1858_v5 = vpop.f32.mrb[18].mxu1 }
 0x220   : > { %v1859_v24 = vpop.f32.mrb[19].mxu1 }
 0x221   : > { %v1339_v10 = vadd.f32 %v1857_v35, %v3005_v14  ;;  %v1860_v57 = vadd.f32 %v1859_v24, %v1858_v5 }
 0x223   : > { %v1436_v12 = vadd.f32 %v1921_v23, %v1339_v10  ;;  %v1342_v60 = vadd.f32 %v1860_v57, %v3005_v14 }
 0x225   : > { %v1498_v15 = vmax.f32 %v1436_v12, 0.0  ;;  %v1439_v20 = vadd.f32 %v1924_v54, %v1342_v60  ;;  %v1861_v28 = vpop.f32.mrb[20].mxu1 }
 0x226   : > { %v1862_v30 = vpop.f32.mrb[21].mxu1 }
 0x227   : > { %1514 = vst [vmem:[%s3013_s28] sm:$0xff] %v1498_v15  ;;  %v1499_v45 = vmax.f32 %v1439_v20, 0.0  ;;  %v1863_v19 = vadd.f32 %v1862_v30, %v1861_v28  ;;  %v1864_v31 = vpop.f32.mrb[22].mxu1 }
 0x228   : > { %v1865_v50 = vpop.f32.mrb[23].mxu1 }
 0x229   : > { %1515 = vst [vmem:[%s3013_s28 + $0x8] sm:$0xff] %v1499_v45  ;;  %v1347_v29 = vadd.f32 %v1863_v19, %v3005_v14  ;;  %v1866_v1 = vadd.f32 %v1865_v50, %v1864_v31 }
 0x22b   : > { %v1444_v32 = vadd.f32 %v1927_v27, %v1347_v29  ;;  %v1350_v18 = vadd.f32 %v1866_v1, %v3005_v14 }
 0x22d   : > { %v1500_v62 = vmax.f32 %v1444_v32, 0.0  ;;  %v1447_v63 = vadd.f32 %v1930_v46, %v1350_v18  ;;  %v1867_v38 = vpop.f32.mrb[24].mxu1 }
 0x22e   : > { %v1868_v6 = vpop.f32.mrb[25].mxu1 }
 0x22f   : > { %1516 = vst [vmem:[%s3013_s28 + $0x10] sm:$0xff] %v1500_v62  ;;  %v1501_v13 = vmax.f32 %v1447_v63, 0.0  ;;  %v1869_v58 = vadd.f32 %v1868_v6, %v1867_v38  ;;  %v1870_v51 = vpop.f32.mrb[26].mxu1 }
 0x230   : > { %v1871_v22 = vpop.f32.mrb[27].mxu1 }
 0x231   : > { %1517 = vst [vmem:[%s3013_s28 + $0x18] sm:$0xff] %v1501_v13  ;;  %v1355_v23 = vadd.f32 %v1869_v58, %v3005_v14  ;;  %v1872_v33 = vadd.f32 %v1871_v22, %v1870_v51 }
 0x233   : > { %v1452_v7 = vadd.f32 %v1933_v53, %v1355_v23  ;;  %v1358_v54 = vadd.f32 %v1872_v33, %v3005_v14 }
 0x235   : > { %v1502_v36 = vmax.f32 %v1452_v7, 0.0  ;;  %v1455_v25 = vadd.f32 %v1936_v47, %v1358_v54  ;;  %v1873_v27 = vpop.f32.mrb[28].mxu1 }
 0x236   : > { %v1874_v49 = vpop.f32.mrb[29].mxu1 }
 0x237   : > { %1518 = vst [vmem:[%s3013_s28 + $0x20] sm:$0xff] %v1502_v36  ;;  %v1503_v56 = vmax.f32 %v1455_v25, 0.0  ;;  %v1875_v46 = vadd.f32 %v1874_v49, %v1873_v27  ;;  %v1876_v39 = vpop.f32.mrb[30].mxu1 }
 0x238   : > { %v1877_v17 = vpop.f32.mrb[31].mxu1 }
 0x239   : > { %1519 = vst [vmem:[%s3013_s28 + $0x28] sm:$0xff] %v1503_v56  ;;  %v1363_v21 = vadd.f32 %v1875_v46, %v3005_v14  ;;  %v1878_v26 = vadd.f32 %v1877_v17, %v1876_v39 }
 0x23b   : > { %v1460_v4 = vadd.f32 %v2990_v55, %v1363_v21  ;;  %v1366_v53 = vadd.f32 %v1878_v26, %v3005_v14 }
 0x23d   : > { %v1504_v43 = vmax.f32 %v1460_v4, 0.0  ;;  %v1463_v47 = vadd.f32 %v2992_v11, %v1366_v53  ;;  %v1879_v8 = vpop.f32.mrb[32].mxu1 }
 0x23e   : > { %v1880_v0 = vpop.f32.mrb[33].mxu1 }
 0x23f   : > { %1520 = vst [vmem:[%s3013_s28 + $0x30] sm:$0xff] %v1504_v43  ;;  %v1505_v59 = vmax.f32 %v1463_v47, 0.0  ;;  %v1881_v42 = vadd.f32 %v1880_v0, %v1879_v8  ;;  %v1882_v3 = vpop.f32.mrb[34].mxu1 }
 0x240   : > { %v1883_v61 = vpop.f32.mrb[35].mxu1 }
 0x241   : > { %1521 = vst [vmem:[%s3013_s28 + $0x38] sm:$0xff] %v1505_v59  ;;  %v1371_v16 = vadd.f32 %v1881_v42, %v3005_v14  ;;  %v1884_v48 = vadd.f32 %v1883_v61, %v1882_v3 }
 0x243   : > { %v1468_v55 = vadd.f32 %v2994_v52, %v1371_v16  ;;  %v1374_v40 = vadd.f32 %v1884_v48, %v3005_v14 }
 0x245   : > { %v1506_v34 = vmax.f32 %v1468_v55, 0.0  ;;  %v1471_v11 = vadd.f32 %v2996_v9, %v1374_v40  ;;  %v1885_v44 = vpop.f32.mrb[36].mxu1 }
 0x246   : > { %v1886_v2 = vpop.f32.mrb[37].mxu1 }
 0x247   : > { %1522 = vst [vmem:[%s3013_s28 + $0x40] sm:$0xff] %v1506_v34  ;;  %v1507_v35 = vmax.f32 %v1471_v11, 0.0  ;;  %v1887_v5 = vadd.f32 %v1886_v2, %v1885_v44  ;;  %v1888_v24 = vpop.f32.mrb[38].mxu1 }
 0x248   : > { %v1889_v10 = vpop.f32.mrb[39].mxu1 }
 0x249   : > { %1523 = vst [vmem:[%s3013_s28 + $0x48] sm:$0xff] %v1507_v35  ;;  %v1379_v57 = vadd.f32 %v1887_v5, %v3005_v14  ;;  %v1890_v12 = vadd.f32 %v1889_v10, %v1888_v24 }
 0x24b   : > { %v1476_v52 = vadd.f32 %v2998_v37, %v1379_v57  ;;  %v1382_v60 = vadd.f32 %v1890_v12, %v3005_v14 }
 0x24d   : > { %v1508_v15 = vmax.f32 %v1476_v52, 0.0  ;;  %v1479_v9 = vadd.f32 %v3000_v41, %v1382_v60  ;;  %v1891_v20 = vpop.f32.mrb[40].mxu1 }
 0x24e   : > { %v1892_v28 = vpop.f32.mrb[41].mxu1 }
 0x24f   : > { %1524 = vst [vmem:[%s3013_s28 + $0x50] sm:$0xff] %v1508_v15  ;;  %v1509_v30 = vmax.f32 %v1479_v9, 0.0  ;;  %v1893_v45 = vadd.f32 %v1892_v28, %v1891_v20  ;;  %v1894_v19 = vpop.f32.mrb[42].mxu1 }
 0x250   : > { %v1895_v31 = vpop.f32.mrb[43].mxu1 }
 0x251   : > { %1525 = vst [vmem:[%s3013_s28 + $0x58] sm:$0xff] %v1509_v30  ;;  %v1896_v50 = vadd.f32 %v1895_v31, %v1894_v19  ;;  %v1387_v58 = vadd.f32 %v1893_v45, %v3005_v14 }
 0x253   : > { %v1390_v29 = vadd.f32 %v1896_v50, %v3005_v14 }
 0x255   : > { %v1897_v1 = vpop.f32.mrb[44].mxu1 }
 0x256   : > { %v1898_v32 = vpop.f32.mrb[45].mxu1 }
 0x257   : > { %v1899_v18 = vadd.f32 %v1898_v32, %v1897_v1  ;;  %v1900_v37 = vpop.f32.mrb[46].mxu1 }
 0x258   : > { %v1901_v62 = vpop.f32.mrb[47].mxu1 }
 0x259   : > { %v1395_v63 = vadd.f32 %v1899_v18, %v3005_v14  ;;  %v1902_v41 = vadd.f32 %v1901_v62, %v1900_v37 }
 0x25b   : > { %v1398_v38 = vadd.f32 %v1902_v41, %v3005_v14 }
 0x25d   : > { %v1955_v6 = vpop.f32.mrb[48].mxu1 }
 0x25e   : > { %v1956_v13 = vpop.f32.mrb[49].mxu1 }
 0x25f   : > { %v1957_v51 = vadd.f32 %v1956_v13, %v1955_v6  ;;  %v1958_v22 = vpop.f32.mrb[50].mxu1 }
 0x260   : > { %v1959_v23 = vpop.f32.mrb[51].mxu1 }
 0x261   : > { %v1484_v33 = vadd.f32 %v1957_v51, %v1387_v58  ;;  %v1960_v7 = vadd.f32 %v1959_v23, %v1958_v22 }
 0x263   : > { %v1510_v54 = vmax.f32 %v1484_v33, 0.0  ;;  %v1487_v36 = vadd.f32 %v1960_v7, %v1390_v29 }
 0x265   : > { %1526 = vst [vmem:[%s3013_s28 + $0x60] sm:$0xff] %v1510_v54  ;;  %v1511_v25 = vmax.f32 %v1487_v36, 0.0  ;;  %v1961_v27 = vpop.f32.mrb[52].mxu1 }
 0x266   : > { %v1962_v49 = vpop.f32.mrb[53].mxu1 }
 0x267   : > { %1527 = vst [vmem:[%s3013_s28 + $0x68] sm:$0xff] %v1511_v25  ;;  %v1963_v56 = vadd.f32 %v1962_v49, %v1961_v27  ;;  %v1964_v46 = vpop.f32.mrb[54].mxu1 }
 0x268   : > { %v1965_v39 = vpop.f32.mrb[55].mxu1 }
 0x269   : > { %v1492_v17 = vadd.f32 %v1963_v56, %v1395_v63  ;;  %v1966_v21 = vadd.f32 %v1965_v39, %v1964_v46 }
 0x26b   : > { %v1512_v14 = vmax.f32 %v1492_v17, 0.0  ;;  %v1495_v26 = vadd.f32 %v1966_v21, %v1398_v38 }
 0x26d   : > { %1528 = vst [vmem:[%s3013_s28 + $0x70] sm:$0xff] %v1512_v14  ;;  %v1513_v4 = vmax.f32 %v1495_v26, 0.0 }
 0x26f   : > { %1529 = vst [vmem:[%s3013_s28 + $0x78] sm:$0xff] %v1513_v4 }
 0x270 PF: > { %s15_s18 = sadd.s32 1, %s2102_s18  }
 0x271   : > { %p12_p4 = scmp.ge.s32.totalorder %s15_s18, 4  }
 0x273   :  { %14 = sbr.rel (!%p12_p4) target bundleno = 1 (0x1), region = 70 }

</bundles_post_ra>
